<compile_context>
chip_gen: v5e
topology: v5e:2x2
jax: 0.10.0
libtpu: 0.0.40
codegen_flags: <defaults>
</compile_context>

<pallas_src>
import math

import jax
import jax.numpy as jnp
from jax.experimental import pallas as pl
from jax.experimental.pallas import tpu as pltpu


_SMALL_SLAB_BYTES = 1 << 20  # per-batch slab below this -> batch-tiled path


def _add_pos_kernel(seqs_ref, pos_ref, out_ref):
    # Row path : seqs/out (TR, L),     pos (TR, L)  -> plain elementwise add.
    # Batch path: seqs/out (TB, R, L), pos (R, L)   -> pos broadcasts over TB.
    # Either way this is a single VPU add per step; the broadcast (batch path)
    # is just vreg replication and is free filler for a mem-bound kernel.
    out_ref[...] = seqs_ref[...] + pos_ref[...]


def make_sinusoidal_table(max_seq_len: int, encoding_dim: int) -> jnp.ndarray:
    """Deterministic sinusoidal buffer, fairseq2 layout: [sin | cos] halves."""
    num_sin = encoding_dim // 2
    positions = jnp.arange(max_seq_len, dtype=jnp.float32)[:, None]        # (L, 1)
    indices = jnp.arange(num_sin, dtype=jnp.float32)[None, :]              # (1, num_sin)
    denom = max(num_sin - 1, 1)                                            # guard E == 2
    factors = jnp.exp(indices * (-math.log(10000.0) / denom))              # (1, num_sin)
    angles = positions * factors                                           # (L, num_sin)
    table = jnp.concatenate([jnp.sin(angles), jnp.cos(angles)], axis=-1)   # (L, E)
    return table.astype(jnp.float32)


def _lane_utilization(l: int) -> float:
    return l / (pl.cdiv(l, 128) * 128)


def _lane_dense_view(S: int, E: int):
    """Pick a 2-D (rows, lanes) view of the trailing (S, E) dims whose last dim
    is a multiple of 128 whenever possible (unmasked vector stores).  For
    ragged S*E, search divisors of S*E for the lane width with the least
    masked-store waste instead of falling straight back to (S, E)."""
    if E % 128 == 0:
        return S, E
    total = S * E
    if total % 128 == 0:
        return total // 128, 128
    # Ragged: masked lane stores are unavoidable; minimize the wasted fraction.
    best_l, best_u = E, _lane_utilization(E)
    divs = set()
    i = 1
    while i * i <= total:                 # trace-time Python; cheap
        if total % i == 0:
            divs.add(i)
            divs.add(total // i)
        i += 1
    for l in sorted(divs):
        if l < 128 or l > 65536:
            continue
        u = _lane_utilization(l)
        if u > best_u + 1e-9:
            best_l, best_u = l, u
    return total // best_l, best_l


def _hw_tile_budget():
    """(target bytes per streamed buffer, vmem_limit_bytes or None), per gen."""
    kind = ""
    try:
        kind = (getattr(jax.devices()[0], "device_kind", "") or "").lower()
    except Exception:
        kind = ""
    if "v7" in kind:
        # 64 MiB physical VMEM: 6 buffers x 6 MiB = 36 MiB, leave headroom.
        return 6 << 20, 48 << 20
    if "v6" in kind:
        return 4 << 20, 48 << 20
    if "v5e" in kind or ("v5" in kind and "lite" in kind):
        return 2 << 20, 32 << 20
    if "v4" in kind or "v5" in kind:
        return 4 << 20, 48 << 20
    # Unknown / older generation: stay under every scoped-VMEM default.
    return 2 << 20, None


def _sublane_multiple(itemsize: int) -> int:
    # f32 -> (8,128); bf16/fp16 -> (16,128); int8/fp8 -> (32,128) packing.
    if itemsize >= 4:
        return 8
    if itemsize == 2:
        return 16
    return 32


def _pick_row_tile(R: int, L: int, itemsize: int, target_bytes: int) -> int:
    """Rows per tile targeting ~target_bytes per streamed buffer, preferring an
    exact divisor of R so no padded edge block (masked loads/stores) exists."""
    rows = max(1, target_bytes // max(1, L * itemsize))
    if rows >= R:
        return R                                  # single full-extent tile
    mult = _sublane_multiple(itemsize)
    rows = max(mult, (rows // mult) * mult)
    rows = min(rows, R)
    if R % rows != 0:
        for cand in range(rows, mult - 1, -mult):
            if R % cand == 0:
                return cand
    return rows                                    # accept padded edge if no divisor


def _pick_batch_tile(B: int, slab_bytes: int, target_bytes: int) -> int:
    """Batch elements per tile for the small-slab path; prefer a divisor of B."""
    tb = max(1, min(B, target_bytes // max(1, slab_bytes)))
    if tb >= B:
        return B
    for cand in range(tb, 0, -1):
        if B % cand == 0:
            return cand
    return tb


class PallasSinusoidalPositionEncoder:
    """JAX/Pallas counterpart of PositionEncoder (sinusoidal flavour)."""

    def __init__(self, encoding_dim: int, max_seq_len: int):
        self.encoding_dim = encoding_dim
        self.max_seq_len = max_seq_len
        # frozen (non-trainable) buffer, deterministic init, kept in float32
        self.weight = make_sinusoidal_table(max_seq_len, encoding_dim)
        # memoized (S, dtype, R, L) -> sliced/cast/reshaped pos slab, so the
        # hot path never re-issues the cast/reshape as separate XLA ops.
        self._pos_cache = {}

    # ------------------------------------------------------------------ API
    def __call__(self, seqs: jnp.ndarray, padding_mask=None) -> jnp.ndarray:
        # seqs: (*, S, E); padding_mask: (*, S) accepted but unused (matches the
        # sinusoidal PositionEncoder semantics).
        if self.max_seq_len is not None:
            seq_len = seqs.shape[-2]
            if seq_len > self.max_seq_len:
                raise ValueError(
                    f"The input sequence length must be less than or equal to "
                    f"the maximum sequence length ({self.max_seq_len}), but is "
                    f"{seq_len} instead."
                )
        return self._do_forward(seqs, padding_mask)

    # ------------------------------------------------------------- internals
    def _get_pos2d(self, S: int, dtype, R: int, L: int) -> jnp.ndarray:
        key = (S, jnp.dtype(dtype).name, R, L)
        pos2d = self._pos_cache.get(key)
        if pos2d is None:
            # NOTE: the add runs in seqs.dtype; an fp32-accumulating reference
            # can differ by ~1 ulp for bf16/fp16 inputs.
            pos2d = self.weight[:S, :].astype(dtype).reshape(R, L)
            self._pos_cache[key] = pos2d
        return pos2d

    def _do_forward(self, seqs: jnp.ndarray, padding_mask=None) -> jnp.ndarray:
        orig_shape = seqs.shape
        S, E = int(orig_shape[-2]), int(orig_shape[-1])
        B = 1
        for d in orig_shape[:-2]:
            B *= int(d)

        # Lane-dense 2-D view of the trailing dims (free row-major reshape).
        R, L = _lane_dense_view(S, E)
        pos2d = self._get_pos2d(S, seqs.dtype, R, L)
        x3d = seqs.reshape(B, R, L)

        itemsize = jnp.dtype(seqs.dtype).itemsize
        target_bytes, vmem_limit = _hw_tile_budget()
        slab_bytes = R * L * itemsize

        if slab_bytes <= _SMALL_SLAB_BYTES:
            # ---- batch-tiled path: amortize per-grid-step overhead over TB
            # batch elements; pos stays a single (R, L) block (constant block
            # index -> its DMA is skipped after the first step) and broadcasts
            # over the batch tile inside the kernel.
            TB = _pick_batch_tile(B, slab_bytes, target_bytes)
            grid = (pl.cdiv(B, TB),)
            in_specs = [
                pl.BlockSpec((TB, R, L), lambda b: (b, 0, 0)),   # seqs
                pl.BlockSpec((R, L), lambda b: (0, 0)),          # shared pos
            ]
            out_specs = pl.BlockSpec((TB, R, L), lambda b: (b, 0, 0))
            dims = ("parallel",)
        else:
            # ---- row-tiled path: (row_tiles, B) with batch innermost so the
            # shared pos tile's block index is constant across consecutive
            # steps (fetched once per row-tile, not once per (batch, tile)).
            TR = _pick_row_tile(R, L, itemsize, target_bytes)
            grid = (pl.cdiv(R, TR), B)
            in_specs = [
                # Leading batch dim squeezed (None == pl.Squeezed()) so the
                # kernel sees plain (TR, L) refs.
                pl.BlockSpec((None, TR, L), lambda r, b: (b, r, 0)),  # seqs
                pl.BlockSpec((TR, L), lambda r, b: (r, 0)),           # shared pos
            ]
            out_specs = pl.BlockSpec((None, TR, L), lambda r, b: (b, r, 0))
            dims = ("parallel", "parallel")

        cp_kwargs = dict(dimension_semantics=dims)
        if vmem_limit is not None:
            cp_kwargs["vmem_limit_bytes"] = vmem_limit

        out = pl.pallas_call(
            _add_pos_kernel,
            out_shape=jax.ShapeDtypeStruct((B, R, L), seqs.dtype),
            grid_spec=pltpu.PrefetchScalarGridSpec(
                num_scalar_prefetch=0,
                grid=grid,
                in_specs=in_specs,
                out_specs=out_specs,
            ),
            compiler_params=pltpu.CompilerParams(**cp_kwargs),
        )(x3d, pos2d)

        return out.reshape(orig_shape)


if __name__ == "__main__":
    B, S, E = 2, 16, 32
    MAX_SEQ_LEN = 64

    key = jax.random.PRNGKey(0)
    seqs = jax.random.normal(key, (B, S, E), dtype=jnp.float32)
    # padding mask (B, S) — accepted by the API, unused by the sinusoidal encoder
    padding_mask = jnp.ones((B, S), dtype=jnp.bool_)

    encoder = PallasSinusoidalPositionEncoder(encoding_dim=E, max_seq_len=MAX_SEQ_LEN)
    out = encoder(seqs, padding_mask)
    out = jax.block_until_ready(out)

    # reference check in plain JAX
    ref = seqs + encoder.weight[:S][None, :, :]
    assert out.shape == seqs.shape
    assert jnp.allclose(out, ref, atol=1e-6), "mismatch vs reference"

    print("KERNEL_OK")
</pallas_src>

<mosaic_0001>
module attributes {stable_mosaic.version = 11 : i64} {
  func.func @_add_pos_kernel(%arg0: i32, %arg1: memref<2x4x128xf32, #tpu.memory_space<vmem>>, %arg2: memref<4x128xf32, #tpu.memory_space<vmem>>, %arg3: memref<2x4x128xf32, #tpu.memory_space<vmem>>) attributes {dimension_semantics = [#tpu.dimension_semantics<parallel>], iteration_bounds = array<i64: 1>, scalar_prefetch = 0 : i64, scratch_operands = 0 : i64, tpu.core_type = #tpu.core_type<tc>, window_params = [{transform_indices = @transform_0, window_bounds = array<i64: 2, 4, 128>}, {pipeline_mode = #tpu.pipeline_mode<synchronous>, transform_indices = @transform_1, window_bounds = array<i64: 4, 128>}, {transform_indices = @transform_2, window_bounds = array<i64: 2, 4, 128>}]} {
    %c0 = arith.constant 0 : index
    %c0_0 = arith.constant 0 : index
    %c0_1 = arith.constant 0 : index
    %0 = vector.load %arg1[%c0, %c0_0, %c0_1] : memref<2x4x128xf32, #tpu.memory_space<vmem>>, vector<2x4x128xf32>
    %c0_2 = arith.constant 0 : index
    %c0_3 = arith.constant 0 : index
    %1 = vector.load %arg2[%c0_2, %c0_3] : memref<4x128xf32, #tpu.memory_space<vmem>>, vector<4x128xf32>
    %2 = vector.shape_cast %1 : vector<4x128xf32> to vector<1x4x128xf32>
    %3 = vector.broadcast %2 : vector<1x4x128xf32> to vector<2x4x128xf32>
    %4 = arith.addf %0, %3 : vector<2x4x128xf32>
    %c0_4 = arith.constant 0 : index
    %c0_5 = arith.constant 0 : index
    %c0_6 = arith.constant 0 : index
    %5 = vector.load %arg3[%c0_4, %c0_5, %c0_6] : memref<2x4x128xf32, #tpu.memory_space<vmem>>, vector<2x4x128xf32>
    tpu.vector_store %arg3[%c0_4, %c0_5, %c0_6], %4 {strides = array<i32>} : memref<2x4x128xf32, #tpu.memory_space<vmem>>, vector<2x4x128xf32>,
    return
  }
  func.func @transform_0(%arg0: i32) -> (i32, i32, i32) {
    %c0_i32 = arith.constant 0 : i32
    %c0_i32_0 = arith.constant 0 : i32
    %c0_i32_1 = arith.constant 0 : i32
    return %arg0, %c0_i32, %c0_i32_0 : i32, i32, i32
  }
  func.func @transform_1(%arg0: i32) -> (i32, i32) {
    %c0_i32 = arith.constant 0 : i32
    %c0_i32_0 = arith.constant 0 : i32
    %c0_i32_1 = arith.constant 0 : i32
    return %c0_i32, %c0_i32_0 : i32, i32
  }
  func.func @transform_2(%arg0: i32) -> (i32, i32, i32) {
    %c0_i32 = arith.constant 0 : i32
    %c0_i32_0 = arith.constant 0 : i32
    %c0_i32_1 = arith.constant 0 : i32
    return %arg0, %c0_i32, %c0_i32_0 : i32, i32, i32
  }
}

</mosaic_0001>

<bundles_post_ra>
// kernel: tpu_custom_call.1
= control target key start
LH: loop header
LB: loop body
LE: loop exit
PB: predicated region body
PF: predicated region fallthrough
CT: control target
= control target key end

     0   :  { %7 = vsyncpa [#allocation3], 0  ;;  %s181_s0 = inlined_call_operand.hbm [shape: f32[2,4,128], index: 0, kind: input, shape index: {}]   ;;  %s182_s1 = inlined_call_operand.hbm [shape: f32[4,128], index: 1, kind: input, shape index: {}]   ;;  %s183_s2 = inlined_call_operand.hbm [shape: f32[2,4,128], index: 2, kind: output, shape index: {}]  }
   0x1   :  { %8 = vsyncpa [#allocation6], 0 }
   0x2   :  { %9 = vsyncpa [#allocation4], 0  ;;  %s14_s11 = sshll.u32 %s181_s0, 4  ;;  %s152_s12 = smov [#allocation2]   ;;  %s15_s11 = int_to_ptr.hbm [resolvable:$true] %s14_s11 }
   0x3   :  { %s16_s13 = sshll.u32 %s152_s12, 4  ;;  %s28_s16 = sshll.u32 %s182_s1, 4  ;;  %s17_s13 = int_to_ptr.vmem [resolvable:$true] %s16_s13  ;;  %s29_s16 = int_to_ptr.hbm [resolvable:$true] %s28_s16 }
   0x4   :  { %s153_s17 = smov 64   ;;  %s154_s18 = smov 4  }
   0x5   :  { %22 = dma.hbm_to_vmem [thread:$0]  %s15_s11, 128, %s17_s13, [#allocation3], %s153_s17, %s153_s17, %s154_s18  }
   0x6   :  { %s155_s19 = smov [#allocation5]  }
   0x7   :  { %s30_s20 = sshll.u32 %s155_s19, 4  ;;  %s31_s20 = int_to_ptr.vmem [resolvable:$true] %s30_s20 }
   0x8   :  { %33 = dma.hbm_to_vmem [thread:$0]  %s29_s16, 64, %s31_s20, [#allocation6]  }
   0x9   :  { %146 = dma.done.wait [#allocation3], 128  }
   0xa   :  { %147 = vsyncadd [#allocation3], 4294967168 }
   0xb   :  { %148 = dma.done.wait [#allocation6], 64  }
   0xc   :  { %149 = vsyncadd [#allocation6], 4294967232  ;;  %s156_s0 = smov [#allocation7]   ;;  %s55_s24 = sshll.u32 %s183_s2, 4  ;;  %v42_v0 = vld [vmem:[#allocation2] sm:$0xf]  ;;  %s56_s24 = int_to_ptr.hbm [resolvable:$true] %s55_s24 }
   0xd   :  { %s53_s21 = sshll.u32 %s156_s0, 4  ;;  %v44_v1 = vld [vmem:[#allocation5] sm:$0xf]  ;;  %v43_v2 = vld [vmem:[#allocation2 + $0x4] sm:$0xf]  ;;  %s54_s21 = int_to_ptr.vmem [resolvable:$true] %s53_s21 }
   0xe   :  { %v45_v3 = vadd.f32 %v44_v1, %v42_v0  ;;  %v46_v4 = vadd.f32 %v44_v1, %v43_v2 }
  0x10   :  { %47 = vst [vmem:[#allocation7] sm:$0xf] %v45_v3 }
  0x11   :  { %48 = vst [vmem:[#allocation7 + $0x4] sm:$0xf] %v46_v4 }
  0x12   :  { %61 = dma.vmem_to_hbm [thread:$0]  %s54_s21, 128, %s56_s24, [#allocation4], %s153_s17, %s153_s17, %s154_s18  }
  0x13   :  { %150 = dma.done.wait [#allocation4], 128  }
  0x14   :  { %151 = vsyncadd [#allocation4], 4294967168 }
  0x15   :  { %66 = vsyncpa [#allocation3], 1 }
  0x16   :  { %67 = vsyncpa [#allocation6], 1 }
  0x17   :  { %68 = vsyncpa [#allocation4], 1 }

</bundles_post_ra>
